<compile_context>
chip_gen: v7x
topology: tpu7x:2x2x1
jax: 0.10.0
libtpu: 0.0.40
codegen_flags: <defaults>
</compile_context>

<pallas_src>
import functools

import jax
import jax.numpy as jnp
from jax.experimental import pallas as pl
from jax.experimental.pallas import tpu as pltpu


def _rope_reference(seq_len, dim, base, dtype):
    """Mirrors the torch cache computation (outer product + duplicated halves)."""
    inv_freq = 1.0 / (base ** (jnp.arange(0, dim, 2, dtype=jnp.float32) / dim))
    t = jnp.arange(seq_len, dtype=jnp.float32)
    freqs = jnp.outer(t, inv_freq)
    emb = jnp.concatenate([freqs, freqs], axis=-1)
    return jnp.cos(emb).astype(dtype), jnp.sin(emb).astype(dtype)


def _rope_kernel(coef_ref, cos_ref, sin_ref, *, mode, tile, pos_per_row):
    """One grid step covers positions [pid*tile, (pid+1)*tile).

    coef_ref: (2, ccols) f32. Row 0 = per-lane inv_freq, row 1 = per-lane
    static phase (all step-invariant column math hoisted to the wrapper).
    angle[r, c] = (base + r*pos_per_row) * coef[0, c] + coef[1, c]
    """
    out_rows, out_cols = cos_ref.shape
    if mode == "split128":
        # Lane-dense half-dim compute: row rc packs position (base+rc) in
        # lanes [0, 64) and position (base+rc+tile/2) in lanes [64, 128).
        crows, ccols = out_rows // 2, out_cols
    elif mode == "cat":
        crows, ccols = out_rows, coef_ref.shape[1]          # ccols == half
    else:  # "full": compute block == output block
        crows, ccols = out_rows, out_cols

    if_row = coef_ref[0:1, :]                                # (1, ccols) f32
    ph_row = coef_ref[1:2, :]                                # (1, ccols) f32

    base = pl.program_id(0) * tile
    r = jax.lax.broadcasted_iota(jnp.int32, (crows, ccols), 0)
    t = (base + r * pos_per_row).astype(jnp.float32)
    angle = t * if_row + ph_row                              # (crows, ccols) f32
    cos_c = jnp.cos(angle)
    sin_c = jnp.sin(angle)

    if mode == "split128":
        h = crows                                            # = tile // 2
        hl = ccols // 2                                      # = 64
        lane = jax.lax.broadcasted_iota(jnp.int32, (crows, ccols), 1)
        left = lane < hl
        # One XLU roll + two VPU selects expand the unique half-frequencies
        # into the duplicated halves; stores stay full-lane and contiguous.
        cos_r = pltpu.roll(cos_c, hl, axis=1)
        sin_r = pltpu.roll(sin_c, hl, axis=1)
        cos_ref[0:h, :] = jnp.where(left, cos_c, cos_r).astype(cos_ref.dtype)
        cos_ref[h:, :] = jnp.where(left, cos_r, cos_c).astype(cos_ref.dtype)
        sin_ref[0:h, :] = jnp.where(left, sin_c, sin_r).astype(sin_ref.dtype)
        sin_ref[h:, :] = jnp.where(left, sin_r, sin_c).astype(sin_ref.dtype)
    elif mode == "cat":
        half = ccols                                         # multiple of 128
        cos_o = cos_c.astype(cos_ref.dtype)
        sin_o = sin_c.astype(sin_ref.dtype)
        cos_ref[:, 0:half] = cos_o
        cos_ref[:, half:] = cos_o
        sin_ref[:, 0:half] = sin_o
        sin_ref[:, half:] = sin_o
    else:
        cos_ref[...] = cos_c.astype(cos_ref.dtype)
        sin_ref[...] = sin_c.astype(sin_ref.dtype)


def mistral_rotary_embedding(x, seq_len, dim, base=10000.0, target_tile=2048,
                             jnp_fallback_max_seq=256):
    """Returns (cos, sin), each (seq_len, dim), dtype == x.dtype."""
    assert dim % 2 == 0
    half = dim // 2
    dtype = x.dtype
    base = float(base)

    # Decode-style tiny seq_len: fused XLA beats kernel dispatch + padding.
    if seq_len <= jnp_fallback_max_seq:
        return _rope_reference(seq_len, dim, base, dtype)

    inv_freq = 1.0 / (base ** (jnp.arange(0, dim, 2, dtype=jnp.float32) / dim))

    # ---- layout / mode selection -------------------------------------------
    if dim == 128:                          # real Mistral head_dim
        mode, pos_per_row = "split128", 1
        out_cols, ccols = dim, 128
        row_mult = 32                       # tile/2 stays a 16-row multiple (bf16)
    elif half % 128 == 0:                   # dim >= 256
        mode, pos_per_row = "cat", 1
        out_cols, ccols = dim, half
        row_mult = 32
    elif dim < 128 and 128 % dim == 0:      # lane-pack k positions per row
        k = 128 // dim
        mode, pos_per_row = "full", k
        out_cols, ccols = 128, 128
        row_mult = 16 * k
    else:                                   # correct but <128-lane fallback
        mode, pos_per_row = "full", 1
        out_cols, ccols = dim, dim
        row_mult = 32

    itemsize = jnp.dtype(dtype).itemsize

    # ---- tile / grid sizing --------------------------------------------------
    # 2 outputs x 2 pipeline buffers per step; keep <= ~8 MiB so v5e's 16 MiB
    # scoped-VMEM default keeps full double-buffering + compute headroom
    # (also well inside v7x's 32 MiB scoped / 64 MiB physical VMEM).
    vmem_budget = 8 * 1024 * 1024
    max_tile = max(row_mult,
                   (vmem_budget // (4 * dim * itemsize)) // row_mult * row_mult)
    target = max(row_mult, min((int(target_tile) // row_mult) * row_mult, max_tile))
    padded0 = pl.cdiv(seq_len, row_mult) * row_mult
    units = padded0 // row_mult
    ntiles = pl.cdiv(padded0, target)
    # v7x: keep >= 2 (and even) grid steps so both TensorCores get balanced work.
    if units >= 2 and ntiles < 2:
        ntiles = 2
    if ntiles > 1 and ntiles % 2 == 1 and units >= ntiles + 1:
        ntiles += 1
    tile = pl.cdiv(padded0, ntiles * row_mult) * row_mult     # positions / step
    padded = ntiles * tile

    out_rows = padded // pos_per_row
    block_rows = tile // pos_per_row

    # ---- step-invariant per-lane coefficients (hoisted out of the kernel) ---
    c = jnp.arange(ccols, dtype=jnp.int32)
    if mode == "split128":
        if_row = inv_freq[c % half]
        ph_row = jnp.where(c >= half, (tile // 2) * if_row, 0.0)
    elif mode == "cat":
        if_row = inv_freq
        ph_row = jnp.zeros_like(if_row)
    else:
        if_row = inv_freq[c % half]
        ph_row = (c // dim).astype(jnp.float32) * if_row
    coef = jnp.stack([if_row.astype(jnp.float32), ph_row.astype(jnp.float32)])

    kernel = functools.partial(_rope_kernel, mode=mode, tile=tile,
                               pos_per_row=pos_per_row)

    transc = 2 * padded * (half if mode in ("split128", "cat") else dim)

    cos_p, sin_p = pl.pallas_call(
        kernel,
        out_shape=(
            jax.ShapeDtypeStruct((out_rows, out_cols), dtype),
            jax.ShapeDtypeStruct((out_rows, out_cols), dtype),
        ),
        grid=(ntiles,),
        in_specs=[pl.BlockSpec((2, ccols), lambda i: (0, 0))],
        out_specs=[
            pl.BlockSpec((block_rows, out_cols), lambda i: (i, 0)),
            pl.BlockSpec((block_rows, out_cols), lambda i: (i, 0)),
        ],
        compiler_params=pltpu.CompilerParams(
            dimension_semantics=("parallel",)),
        cost_estimate=pl.CostEstimate(
            flops=6 * padded * dim,
            transcendentals=transc,
            bytes_accessed=2 * padded * dim * itemsize + coef.size * 4),
    )(coef)

    if mode == "full" and pos_per_row > 1:
        # Free row-major reshape back to (padded, dim), then drop pad rows.
        cos = cos_p.reshape(padded, dim)[:seq_len]
        sin = sin_p.reshape(padded, dim)[:seq_len]
    else:
        cos = cos_p[:seq_len]
        sin = sin_p[:seq_len]
    return cos, sin


if __name__ == "__main__":
    key = jax.random.PRNGKey(0)

    # 1) Small shapes consistent with the module (batch=2, seq=8, head_dim=32),
    #    forced through the Pallas kernel (lane-packed full-dim path).
    batch, seq_len, dim = 2, 8, 32
    x = jax.random.normal(key, (batch, seq_len, dim), dtype=jnp.float32)
    cos, sin = mistral_rotary_embedding(x, seq_len=seq_len, dim=dim,
                                        base=10000.0, jnp_fallback_max_seq=0)
    cos = jax.block_until_ready(cos)
    sin = jax.block_until_ready(sin)
    cos_ref, sin_ref = _rope_reference(seq_len, dim, 10000.0, x.dtype)
    assert cos.shape == (seq_len, dim) and sin.shape == (seq_len, dim)
    assert cos.dtype == x.dtype and sin.dtype == x.dtype
    assert jnp.allclose(cos, cos_ref, atol=1e-4)
    assert jnp.allclose(sin, sin_ref, atol=1e-4)

    # 2) Real Mistral head_dim=128, bf16: half-dim "split128" path, grid of 2
    #    (both v7x TensorCores get a tile).
    seq_len2, dim2 = 300, 128
    x2 = jax.random.normal(key, (2, seq_len2, dim2), dtype=jnp.bfloat16)
    cos2, sin2 = mistral_rotary_embedding(x2, seq_len=seq_len2, dim=dim2,
                                          base=10000.0)
    cos2 = jax.block_until_ready(cos2)
    sin2 = jax.block_until_ready(sin2)
    cos2_ref, sin2_ref = _rope_reference(seq_len2, dim2, 10000.0, jnp.float32)
    assert cos2.shape == (seq_len2, dim2) and cos2.dtype == jnp.bfloat16
    assert jnp.allclose(cos2.astype(jnp.float32), cos2_ref, atol=1e-2)
    assert jnp.allclose(sin2.astype(jnp.float32), sin2_ref, atol=1e-2)

    # 3) dim=256 (half-dim "cat" path), f32.
    seq_len3, dim3 = 272, 256
    x3 = jax.random.normal(key, (1, seq_len3, dim3), dtype=jnp.float32)
    cos3, sin3 = mistral_rotary_embedding(x3, seq_len=seq_len3, dim=dim3,
                                          base=10000.0)
    cos3 = jax.block_until_ready(cos3)
    sin3 = jax.block_until_ready(sin3)
    cos3_ref, sin3_ref = _rope_reference(seq_len3, dim3, 10000.0, x3.dtype)
    assert jnp.allclose(cos3, cos3_ref, atol=2e-3)
    assert jnp.allclose(sin3, sin3_ref, atol=2e-3)

    # 4) Tiny decode-style call takes the fused-XLA fallback (no kernel dispatch).
    cos4, sin4 = mistral_rotary_embedding(x, seq_len=seq_len, dim=dim,
                                          base=10000.0)
    cos4 = jax.block_until_ready(cos4)
    assert cos4.shape == (seq_len, dim) and cos4.dtype == x.dtype
    assert jnp.allclose(cos4, cos_ref, atol=1e-4)

    print("KERNEL_OK")
</pallas_src>

<mosaic_0001>
module attributes {stable_mosaic.version = 11 : i64} {
  func.func @_rope_kernel(%arg0: i32, %arg1: memref<2x128xf32, #tpu.memory_space<vmem>>, %arg2: memref<16x128xf32, #tpu.memory_space<vmem>>, %arg3: memref<16x128xf32, #tpu.memory_space<vmem>>) attributes {dimension_semantics = [#tpu.dimension_semantics<parallel>], iteration_bounds = array<i64: 1>, scalar_prefetch = 0 : i64, scratch_operands = 0 : i64, tpu.core_type = #tpu.core_type<tc>, window_params = [{pipeline_mode = #tpu.pipeline_mode<synchronous>, transform_indices = @transform_0, window_bounds = array<i64: 2, 128>}, {transform_indices = @transform_1, window_bounds = array<i64: 16, 128>}, {transform_indices = @transform_2, window_bounds = array<i64: 16, 128>}]} {
    %c0 = arith.constant 0 : index
    %c0_0 = arith.constant 0 : index
    %0 = vector.load %arg1[%c0, %c0_0] : memref<2x128xf32, #tpu.memory_space<vmem>>, vector<1x128xf32>
    %c1 = arith.constant 1 : index
    %c0_1 = arith.constant 0 : index
    %1 = vector.load %arg1[%c1, %c0_1] : memref<2x128xf32, #tpu.memory_space<vmem>>, vector<1x128xf32>
    %c64_i32 = arith.constant 64 : i32
    %2 = arith.muli %arg0, %c64_i32 : i32
    %3 = tpu.iota {dimensions = array<i32: 0>} : vector<16x128xi32>
    %c4_i32 = arith.constant 4 : i32
    %4 = vector.broadcast %c4_i32 : i32 to vector<16x128xi32>
    %5 = arith.muli %3, %4 : vector<16x128xi32>
    %6 = vector.broadcast %2 : i32 to vector<16x128xi32>
    %7 = arith.addi %6, %5 : vector<16x128xi32>
    %8 = arith.sitofp %7 : vector<16x128xi32> to vector<16x128xf32>
    %9 = vector.broadcast %0 : vector<1x128xf32> to vector<16x128xf32>
    %10 = arith.mulf %8, %9 : vector<16x128xf32>
    %11 = vector.broadcast %1 : vector<1x128xf32> to vector<16x128xf32>
    %12 = arith.addf %10, %11 : vector<16x128xf32>
    %13 = math.cos %12 : vector<16x128xf32>
    %14 = math.sin %12 : vector<16x128xf32>
    %c0_2 = arith.constant 0 : index
    %c0_3 = arith.constant 0 : index
    %15 = vector.load %arg2[%c0_2, %c0_3] : memref<16x128xf32, #tpu.memory_space<vmem>>, vector<16x128xf32>
    tpu.vector_store %arg2[%c0_2, %c0_3], %13 {strides = array<i32>} : memref<16x128xf32, #tpu.memory_space<vmem>>, vector<16x128xf32>,
    %c0_4 = arith.constant 0 : index
    %c0_5 = arith.constant 0 : index
    %16 = vector.load %arg3[%c0_4, %c0_5] : memref<16x128xf32, #tpu.memory_space<vmem>>, vector<16x128xf32>
    tpu.vector_store %arg3[%c0_4, %c0_5], %14 {strides = array<i32>} : memref<16x128xf32, #tpu.memory_space<vmem>>, vector<16x128xf32>,
    return
  }
  func.func @transform_0(%arg0: i32) -> (i32, i32) {
    %c0_i32 = arith.constant 0 : i32
    %c0_i32_0 = arith.constant 0 : i32
    %c0_i32_1 = arith.constant 0 : i32
    return %c0_i32, %c0_i32_0 : i32, i32
  }
  func.func @transform_1(%arg0: i32) -> (i32, i32) {
    %c0_i32 = arith.constant 0 : i32
    %c0_i32_0 = arith.constant 0 : i32
    return %arg0, %c0_i32 : i32, i32
  }
  func.func @transform_2(%arg0: i32) -> (i32, i32) {
    %c0_i32 = arith.constant 0 : i32
    %c0_i32_0 = arith.constant 0 : i32
    return %arg0, %c0_i32 : i32, i32
  }
}

</mosaic_0001>

<bundles_post_ra>
// kernel: tpu_custom_call.1
= control target key start
LH: loop header
LB: loop body
LE: loop exit
PB: predicated region body
PF: predicated region fallthrough
CT: control target
= control target key end

     0   :  { %8 = vsyncpa [#allocation3], 0  ;;  %s754_s0 = inlined_call_operand.hbm [shape: f32[2,128], index: 0, kind: input, shape index: {}]   ;;  %s755_s1 = inlined_call_operand.hbm [shape: f32[16,128], index: 1, kind: output, shape index: {0}]   ;;  %s756_s2 = inlined_call_operand.hbm [shape: f32[16,128], index: 2, kind: output, shape index: {1}]  }
   0x1   :  { %9 = vsyncpa [#allocation4], 0 }
   0x2   :  { %10 = vsyncpa [#allocation7], 0  ;;  %s617_s9 = smov [#allocation2]   ;;  %s545_s13 = scalar_lea.hbm %s754_s0, 32 }
   0x3   :  { %s17_s10 = sshll.u32 %s617_s9, 4  ;;  %p546_p0 = scmp.ne.s32.totalorder %s754_s0, %s545_s13  ;;  %s18_s10 = int_to_ptr.vmem [resolvable:$true] %s17_s10 }
   0x4   :  { %p549_p1 = scmp.lt.u32.totalorder %s545_s13, %s754_s0 }
   0x6   :  { %p551_p2 = pnand %p549_p1, %p546_p0 }
   0x8   :  { %554 = shalt.err (!%p551_p2)
}
   0x9   :  { %s555_s18 = scalar_lea.vmem %s18_s10, 32  ;;  %p560_p4 = scmp.lt.s32.totalorder %s18_s10, %s18_s10 }
   0xa   :  { %p556_p3 = scmp.ne.s32.totalorder %s18_s10, %s555_s18  ;;  %p561_p5 = scmp.lt.s32.totalorder %s555_s18, %s555_s18 }
   0xc   :  { %p562_p6 = por %p561_p5, %p560_p4 }
   0xe   :  { %p563_p7 = pnand %p562_p6, %p556_p3 }
  0x10   :  { %566 = shalt.err (!%p563_p7)
}
  0x11   :  { %20 = dma.hbm_to_vmem [thread:$0]  %s754_s0, 32, %s18_s10, [#allocation3]  }
  0x12   :  { %611 = dma.done.wait [#allocation3], 32  }
  0x13   :  { %612 = vsyncadd [#allocation3], 4294967264  ;;  %v27_v0 = vlaneseq  ;;  %v500_v6 = vld [vmem:[#allocation2] ss:$0 sm:$0xff]  ;;  %v501_v7 = vld [vmem:[#allocation2 + $0x1] ss:$0 sm:$0xff] }
  0x14   :  { %v618_v32 = vmov 683565275   ;;  %v619_v34 = vmov 2475754826   ;;  %v620_v36 = vmov 2131351028  }
  0x15   :  { %v28_v1 = vshrl.u32 %v27_v0, 7  ;;  %v621_v38 = vmov 2102212464   ;;  %v622_v40 = vmov 920167782   ;;  %s624_s0 = smov [#allocation5]  }
  0x16   :  { %v623_v47 = vmov 1326507024   ;;  %s472_s21 = sshll.u32 %s624_s0, 4  ;;  %s625_s22 = smov [#allocation6]   ;;  %s473_s21 = int_to_ptr.vmem [resolvable:$true] %s472_s21 }
  0x17   :  { %v30_v2 = vmul.u32 4, %v28_v1  ;;  %v29_v3 = vadd.s32 8, %v28_v1  ;;  %s484_s23 = sshll.u32 %s625_s22, 4  ;;  %s567_s24 = scalar_lea.vmem %s473_s21, 256  ;;  %s723_s23 = int_to_ptr.vmem [resolvable:$true] %s484_s23 }
  0x18   :  { %p568_p8 = scmp.ne.s32.totalorder %s473_s21, %s567_s24  ;;  %p572_p9 = scmp.lt.s32.totalorder %s473_s21, %s473_s21 }
  0x19   :  { %v35_v4 = vcvt.s32.f32 %v30_v2  ;;  %v31_v5 = vmul.u32 4, %v29_v3  ;;  %p573_p10 = scmp.lt.s32.totalorder %s567_s24, %s567_s24 }
  0x1b   :  { %v41_v8 = vmul.f32 %v500_v6, %v35_v4  ;;  %v36_v9 = vcvt.s32.f32 %v31_v5  ;;  %p574_p11 = por %p573_p10, %p572_p9 }
  0x1d   :  { %v655_v10 = vadd.f32 %v501_v7, %v41_v8  ;;  %v42_v11 = vmul.f32 %v500_v6, %v36_v9  ;;  %p575_p12 = pnand %p574_p11, %p568_p8 }
  0x1f   :  { %v49_v12 = vand.u32 2147483647, %v655_v10  ;;  %v52_v13 = vand.u32 2139095040, %v655_v10  ;;  %v659_v14 = vadd.f32 %v501_v7, %v42_v11  ;;  %vm51_vm14 = vcmp.lt.s32.totalorder %v655_v10, 0 }
  0x21   :  { %v53_v15 = vshrl.u32 %v52_v13, 23  ;;  %v56_v16 = vand.u32 8388607, %v49_v12  ;;  %v152_v17 = vand.u32 2147483647, %v659_v14  ;;  %v155_v18 = vand.u32 2139095040, %v659_v14 }
  0x22   :  { %vm50_vm15 = vcmp.le.f32.partialorder %v49_v12, 0.7853982 }
  0x23   :  { %v502_v19 = vadd.s32 4294967169, %v53_v15  ;;  %v156_v20 = vshrl.u32 %v155_v18, 23  ;;  %v57_v22 = vor.u32 8388608, %v56_v16  ;;  %v667_v24 = vand.u32 8388607, %v152_v17 }
  0x25   :  { %v59_v21 = vadd.s32 1, %v502_v19  ;;  %v506_v23 = vadd.s32 4294967169, %v156_v20  ;;  %v669_v29 = vshll.u32 %v57_v22, 8  ;;  %v160_v30 = vor.u32 8388608, %v667_v24 }
  0x27   :  { %vm60_vm0 = vcmp.gt.s32.totalorder %v59_v21, 0  ;;  %v162_v26 = vadd.s32 1, %v506_v23 }
  0x28   :  { %v61_v25 = vsel %vm60_vm0, %v59_v21, 0  ;;  %vm154_vm0 = vcmp.lt.s32.totalorder %v659_v14, 0 }
  0x29   :  { %v62_v27 = vshrl.u32 %v61_v25, 5  ;;  %v63_v28 = vand.u32 31, %v61_v25  ;;  %vm163_vm1 = vcmp.gt.s32.totalorder %v162_v26, 0 }
  0x2a   :  { %v164_v52 = vsel %vm163_vm1, %v162_v26, 0  ;;  %vm153_vm1 = vcmp.le.f32.partialorder %v152_v17, 0.7853982 }
  0x2b   :  { %v64_v31 = vsub.s32 32, %v63_v28  ;;  %v66_v33 = vshll.u32 %v618_v32, %v63_v28  ;;  %v69_v35 = vshll.u32 %v619_v34, %v63_v28  ;;  %v72_v37 = vshll.u32 %v620_v36, %v63_v28 }
  0x2c   :  { %v75_v39 = vshll.u32 %v621_v38, %v63_v28  ;;  %v78_v41 = vshll.u32 %v622_v40, %v63_v28  ;;  %vm81_vm2 = vcmp.lt.s32.totalorder %v62_v27, 1  ;;  %vm82_vm3 = vcmp.lt.s32.totalorder %v62_v27, 2 }
  0x2d   :  { %v65_v42 = vshrl.u32 %v618_v32, %v64_v31  ;;  %v67_v43 = vshrl.u32 %v619_v34, %v64_v31  ;;  %v70_v44 = vshrl.u32 %v620_v36, %v64_v31  ;;  %v73_v45 = vshrl.u32 %v621_v38, %v64_v31 }
  0x2e   :  { %v76_v46 = vshrl.u32 %v622_v40, %v64_v31  ;;  %v79_v48 = vshrl.u32 %v623_v47, %v64_v31  ;;  %vm83_vm4 = vcmp.lt.s32.totalorder %v62_v27, 3  ;;  %vm84_vm5 = vcmp.lt.s32.totalorder %v62_v27, 4 }
  0x2f   :  { %v68_v49 = vor.u32 %v67_v43, %v66_v33  ;;  %v71_v50 = vor.u32 %v70_v44, %v69_v35  ;;  %v74_v51 = vor.u32 %v73_v45, %v72_v37  ;;  %v165_v55 = vshrl.u32 %v164_v52, 5 }
  0x30   :  { %v77_v53 = vor.u32 %v76_v46, %v75_v39  ;;  %v80_v54 = vor.u32 %v79_v48, %v78_v41  ;;  %v166_v56 = vand.u32 31, %v164_v52 }
  0x31   :  { %v85_v57 = vsel %vm81_vm2, %v65_v42, %v68_v49  ;;  %v86_v58 = vsel %vm84_vm5, %v74_v51, 2102212464  ;;  %v89_v59 = vsel %vm81_vm2, %v68_v49, %v71_v50  ;;  %v93_v60 = vsel %vm81_vm2, %v71_v50, %v74_v51 }
  0x32   :  { %v87_v61 = vsel %vm83_vm4, %v71_v50, %v86_v58  ;;  %v90_v62 = vsel %vm84_vm5, %v77_v53, 920167782  ;;  %v94_v63 = vsel %vm84_vm5, %v80_v54, 1326507024  ;;  %v167_v0 = vsub.s32 32, %v166_v56 }
  0x33   :  { %v88_v1 = vsel %vm82_vm3, %v85_v57, %v87_v61  ;;  %v91_v2 = vsel %vm83_vm4, %v74_v51, %v90_v62  ;;  %v95_v3 = vsel %vm83_vm4, %v77_v53, %v94_v63  ;;  %v169_v4 = vshll.u32 %v618_v32, %v166_v56 }
  0x34   :  { %v92_v5 = vsel %vm82_vm3, %v89_v59, %v91_v2  ;;  %v96_v6 = vsel %vm82_vm3, %v93_v60, %v95_v3  ;;  %v104_v7 = vmul.u32 %v669_v29, %v88_v1  ;;  %v168_v8 = vshrl.u32 %v618_v32, %v167_v0 }
  0x35   :  { %v684_v9 = vmul.u32.u64.low %v669_v29, %v96_v6  ;;  %v685_v11 = vmul.u32.u64.high %v669_v29, %v96_v6, %v684_v9  ;;  %v688_v13 = vmul.u32.u64.low %v669_v29, %v92_v5  ;;  %v689_v15 = vmul.u32.u64.high %v669_v29, %v92_v5, %v688_v13 }
  0x36   :  { %v170_v16 = vshrl.u32 %v619_v34, %v167_v0  ;;  %v172_v18 = vshll.u32 %v619_v34, %v166_v56  ;;  %v173_v19 = vshrl.u32 %v620_v36, %v167_v0  ;;  %v175_v20 = vshll.u32 %v620_v36, %v166_v56 }
  0x37   :  { %v176_v21 = vshrl.u32 %v621_v38, %v167_v0  ;;  %v178_v22 = vshll.u32 %v621_v38, %v166_v56  ;;  %v179_v23 = vshrl.u32 %v622_v40, %v167_v0  ;;  %v181_v25 = vshll.u32 %v622_v40, %v166_v56 }
  0x38   :  { %v171_v26 = vor.u32 %v170_v16, %v169_v4  ;;  %v174_v27 = vor.u32 %v173_v19, %v172_v18  ;;  %v182_v28 = vshrl.u32 %v623_v47, %v167_v0  ;;  %vm184_vm6 = vcmp.lt.s32.totalorder %v165_v55, 1 }
  0x39   :  { %vm106_vm7 = vc.u32 %v685_v11, %v688_v13  ;;  %v107_v31 = vadd.s32 1, %v689_v15  ;;  %v177_v32 = vor.u32 %v176_v21, %v175_v20  ;;  %v200_v29 = vshll.u32 %v160_v30, 8 }
  0x3a   :  { %v180_v33 = vor.u32 %v179_v23, %v178_v22  ;;  %v183_v34 = vor.u32 %v182_v28, %v181_v25  ;;  %vm185_vm8 = vcmp.lt.s32.totalorder %v165_v55, 2  ;;  %vm186_vm9 = vcmp.lt.s32.totalorder %v165_v55, 3 }
  0x3b   :  { %v108_v35 = vsel %vm106_vm7, %v107_v31, %v689_v15  ;;  %vm187_vm10 = vcmp.lt.s32.totalorder %v165_v55, 4  ;;  %v188_v36 = vsel %vm184_vm6, %v168_v8, %v171_v26  ;;  %v192_v37 = vsel %vm184_vm6, %v171_v26, %v174_v27 }
  0x3c   :  { %v109_v38 = vadd.s32 %v108_v35, %v104_v7  ;;  %v189_v39 = vsel %vm187_vm10, %v177_v32, 2102212464  ;;  %v193_v40 = vsel %vm187_vm10, %v180_v33, 920167782  ;;  %v196_v41 = vsel %vm184_vm6, %v174_v27, %v177_v32 }
  0x3d   :  { %v190_v42 = vsel %vm186_vm9, %v174_v27, %v189_v39  ;;  %v194_v43 = vsel %vm186_vm9, %v177_v32, %v193_v40  ;;  %v197_v24 = vsel %vm187_vm10, %v183_v34, 1326507024  ;;  %v105_v2 = vadd.s32 %v688_v13, %v685_v11 }
  0x3e   :  { %v110_v30 = vadd.s32 536870912, %v109_v38  ;;  %v195_v44 = vsel %vm185_vm8, %v192_v37, %v194_v43  ;;  %v198_v45 = vsel %vm186_vm9, %v180_v33, %v197_v24  ;;  %v191_v46 = vsel %vm185_vm8, %v188_v36, %v190_v42 }
  0x3f   :  { %v199_v47 = vsel %vm185_vm8, %v196_v41, %v198_v45  ;;  %v702_v48 = vmul.u32.u64.low %v200_v29, %v195_v44  ;;  %v703_v49 = vmul.u32.u64.high %v200_v29, %v195_v44, %v702_v48  ;;  %v207_v54 = vmul.u32 %v200_v29, %v191_v46 }
  0x40   :  { %v111_v50 = vshrl.u32 %v110_v30, 30  ;;  %v705_v51 = vmul.u32.u64.low %v200_v29, %v199_v47  ;;  %v706_v52 = vmul.u32.u64.high %v200_v29, %v199_v47, %v705_v51  ;;  %vm141_vm8 = vweird.f32 %v655_v10 }
  0x41   :  { %v210_v56 = vadd.s32 1, %v703_v49 }
  0x42   :  { %v112_v53 = vshll.u32 %v111_v50, 30  ;;  %vm209_vm11 = vc.u32 %v706_v52, %v702_v48  ;;  %v135_v26 = vsub.s32 4, %v111_v50  ;;  %v208_v11 = vadd.s32 %v702_v48, %v706_v52 }
  0x43   :  { %v211_v58 = vsel %vm209_vm11, %v210_v56, %v703_v49 }
  0x44   :  { %v113_v57 = vsub.s32 %v109_v38, %v112_v53  ;;  %v212_v60 = vadd.s32 %v211_v58, %v207_v54  ;;  %v136_v33 = vsel %vm51_vm14, %v135_v26, %v111_v50 }
  0x45   :  { %v138_v38 = vsel %vm50_vm15, 0, %v136_v33 }
  0x46   :  { %v115_v59 = vsub.s32 0, %v113_v57  ;;  %v213_v61 = vadd.s32 536870912, %v212_v60  ;;  %v348_v43 = vadd.s32 3, %v138_v38  ;;  %v142_v45 = vand.u32 3, %v138_v38 }
  0x48   :  { %v503_v55 = vmin.u32 %v115_v59, %v113_v57  ;;  %v214_v63 = vshrl.u32 %v213_v61, 30  ;;  %v349_v12 = vand.u32 3, %v348_v43  ;;  %vm147_vm2 = vcmp.eq.s32.totalorder %v142_v45, 2 }
  0x49   :  { %vm144_vm4 = vcmp.eq.s32.totalorder %v142_v45, 0  ;;  %vm143_vm6 = vcmp.lt.s32.totalorder %v142_v45, 2 }
  0x4a   :  { %v117_v62 = vclz %v503_v55  ;;  %v215_v1 = vshll.u32 %v214_v63, 30  ;;  %v238_v30 = vsub.s32 4, %v214_v63  ;;  %vm354_vm3 = vcmp.eq.s32.totalorder %v349_v12, 2 }
  0x4b   :  { %vm351_vm5 = vcmp.eq.s32.totalorder %v349_v12, 0  ;;  %vm350_vm7 = vcmp.lt.s32.totalorder %v349_v12, 2 }
  0x4c   :  { %v504_v0 = vadd.s32 4294967294, %v117_v62  ;;  %v216_v4 = vsub.s32 %v212_v60, %v215_v1  ;;  %v239_v47 = vsel %vm154_vm0, %v238_v30, %v214_v63 }
  0x4d   :  { %v241_v51 = vsel %vm153_vm1, 0, %v239_v47 }
  0x4e   :  { %vm505_vm12 = vcmp.lt.s32.totalorder %v504_v0, 0  ;;  %v218_v8 = vsub.s32 0, %v216_v4  ;;  %v245_v63 = vand.u32 3, %v241_v51 }
  0x4f   :  { %v120_v3 = vsel %vm505_vm12, 0, %v504_v0 }
  0x50   :  { %v121_v5 = vsub.s32 32, %v120_v3  ;;  %v122_v6 = vshll.u32 %v113_v57, %v120_v3  ;;  %v125_v7 = vsub.s32 4294967266, %v120_v3  ;;  %v507_v16 = vmin.u32 %v218_v8, %v216_v4 }
  0x51   :  { %v452_v57 = vadd.s32 3, %v241_v51  ;;  %vm250_vm9 = vcmp.eq.s32.totalorder %v245_v63, 2  ;;  %vm247_vm11 = vcmp.eq.s32.totalorder %v245_v63, 0 }
  0x52   :  { %v123_v9 = vshrl.u32 %v105_v2, %v121_v5  ;;  %v126_v15 = vadd.s32 127, %v125_v7  ;;  %v220_v20 = vclz %v507_v16 }
  0x53   :  { %v453_v0 = vand.u32 3, %v452_v57 }
  0x54   :  { %v124_v18 = vor.u32 %v123_v9, %v122_v6  ;;  %v127_v19 = vshll.u32 %v126_v15, 23  ;;  %v508_v23 = vadd.s32 4294967294, %v220_v20 }
  0x55   :  { %vm458_vm10 = vcmp.eq.s32.totalorder %v453_v0, 2  ;;  %vm455_vm12 = vcmp.eq.s32.totalorder %v453_v0, 0 }
  0x56   :  { %v128_v21 = vor.u32 4788187, %v127_v19  ;;  %v131_v22 = vcvt.s32.f32 %v124_v18  ;;  %vm509_vm13 = vcmp.lt.s32.totalorder %v508_v23, 0 }
  0x57   :  { %v223_v27 = vsel %vm509_vm13, 0, %v508_v23  ;;  %vm246_vm13 = vcmp.lt.s32.totalorder %v245_v63, 2 }
  0x58   :  { %v129_v25 = vand.u32 2147483647, %v128_v21  ;;  %v224_v28 = vsub.s32 32, %v223_v27  ;;  %v225_v31 = vshll.u32 %v216_v4, %v223_v27  ;;  %v228_v32 = vsub.s32 4294967266, %v223_v27 }
  0x5a   :  { %v132_v13 = vmul.f32 %v131_v22, %v129_v25  ;;  %v226_v34 = vshrl.u32 %v208_v11, %v224_v28  ;;  %v229_v35 = vadd.s32 127, %v228_v32 }
  0x5c   :  { %v133_v29 = vxor.u32 2147483648, %v132_v13  ;;  %v227_v39 = vor.u32 %v226_v34, %v225_v31  ;;  %v230_v40 = vshll.u32 %v229_v35, 23 }
  0x5e   :  { %v134_v36 = vsel %vm51_vm14, %v133_v29, %v132_v13  ;;  %v231_v41 = vor.u32 4788187, %v230_v40  ;;  %v234_v42 = vcvt.s32.f32 %v227_v39  ;;  %vm454_vm14 = vcmp.lt.s32.totalorder %v453_v0, 2 }
  0x5f   :  { %v137_v37 = vsel %vm50_vm15, %v655_v10, %v134_v36  ;;  %vm244_vm15 = vweird.f32 %v659_v14 }
  0x60   :  { %537 = vcosq.f32 %v137_v37  ;;  %v232_v24 = vand.u32 2147483647, %v231_v41 }
  0x61   :  { %539 = vsinq.f32 %v137_v37 }
  0x62   :  { %v235_v44 = vmul.f32 %v234_v42, %v232_v24 }
  0x64   :  { %v236_v46 = vxor.u32 2147483648, %v235_v44 }
  0x66   :  { %v237_v48 = vsel %vm154_vm0, %v236_v46, %v235_v44 }
  0x67   :  { %v240_v50 = vsel %vm153_vm1, %v659_v14, %v237_v48 }
  0x68   :  { %541 = vcosq.f32 %v240_v50 }
  0x69   :  { %543 = vsinq.f32 %v240_v50 }
  0x6a   :  { %v538_v49 = vpop.eup %537 }
  0x6b   :  { %v540_v52 = vpop.eup %539  ;;  %v148_v53 = vxor.u32 2147483648, %v538_v49 }
  0x6c   :  { %v145_v54 = vxor.u32 2147483648, %v540_v52 }
  0x6d   :  { %v149_v17 = vsel %vm147_vm2, %v148_v53, %v540_v52  ;;  %v356_v56 = vsel %vm354_vm3, %v148_v53, %v540_v52 }
  0x6e   :  { %v146_v58 = vsel %vm144_vm4, %v538_v49, %v145_v54  ;;  %v353_v59 = vsel %vm351_vm5, %v538_v49, %v145_v54 }
  0x6f   :  { %v150_v60 = vsel %vm143_vm6, %v146_v58, %v149_v17  ;;  %v357_v55 = vsel %vm350_vm7, %v353_v59, %v356_v56 }
  0x70   :  { %v151_v61 = vsel %vm141_vm8, nan, %v150_v60  ;;  %v358_v62 = vsel %vm141_vm8, nan, %v357_v55 }
  0x71   :  { %463 = vst [vmem:[#allocation5] sm:$0xff] %v151_v61  ;;  %465 = vst [vmem:[#allocation6] sm:$0xff] %v358_v62 }
  0x72   :  { %v542_v1 = vpop.eup %541 }
  0x73   :  { %v544_v2 = vpop.eup %543  ;;  %v251_v3 = vxor.u32 2147483648, %v542_v1 }
  0x74   :  { %v248_v10 = vxor.u32 2147483648, %v544_v2 }
  0x75   :  { %v252_v4 = vsel %vm250_vm9, %v251_v3, %v544_v2  ;;  %v460_v5 = vsel %vm458_vm10, %v251_v3, %v544_v2 }
  0x76   :  { %v249_v6 = vsel %vm247_vm11, %v542_v1, %v248_v10  ;;  %v457_v7 = vsel %vm455_vm12, %v542_v1, %v248_v10 }
  0x77   :  { %v253_v8 = vsel %vm246_vm13, %v249_v6, %v252_v4  ;;  %v461_v9 = vsel %vm454_vm14, %v457_v7, %v460_v5 }
  0x78   :  { %v254_v15 = vsel %vm244_vm15, nan, %v253_v8  ;;  %v462_v16 = vsel %vm244_vm15, nan, %v461_v9 }
  0x79   :  { %464 = vst [vmem:[#allocation5 + $0x8] sm:$0xff] %v254_v15  ;;  %466 = vst [vmem:[#allocation6 + $0x8] sm:$0xff] %v462_v16 }
  0x7a   :  { %578 = shalt.err (!%p575_p12)
}
  0x7b   :  { %s579_s27 = scalar_lea.hbm %s755_s1, 256 }
  0x7c   :  { %p580_p13 = scmp.ne.s32.totalorder %s755_s1, %s579_s27  ;;  %p583_p0 = scmp.lt.u32.totalorder %s579_s27, %s755_s1 }
  0x7e   :  { %p585_p1 = pnand %p583_p0, %p580_p13 }
  0x80   :  { %588 = shalt.err (!%p585_p1)
}
  0x81   :  { %s626_s4 = smov 128   ;;  %s627_s5 = smov 8  }
  0x82   :  { %478 = dma.vmem_to_hbm [thread:$0]  %s473_s21, 256, %s755_s1, [#allocation4], %s626_s4, %s626_s4, %s627_s5  }
  0x83   :  { %s589_s8 = scalar_lea.vmem %s723_s23, 256  ;;  %p594_p3 = scmp.lt.s32.totalorder %s723_s23, %s723_s23 }
  0x84   :  { %p590_p2 = scmp.ne.s32.totalorder %s723_s23, %s589_s8  ;;  %p595_p4 = scmp.lt.s32.totalorder %s589_s8, %s589_s8 }
  0x86   :  { %p596_p5 = por %p595_p4, %p594_p3 }
  0x88   :  { %p597_p6 = pnand %p596_p5, %p590_p2 }
  0x8a   :  { %600 = shalt.err (!%p597_p6)
}
  0x8b   :  { %s601_s11 = scalar_lea.hbm %s756_s2, 256 }
  0x8c   :  { %p602_p7 = scmp.ne.s32.totalorder %s756_s2, %s601_s11  ;;  %p605_p8 = scmp.lt.u32.totalorder %s601_s11, %s756_s2 }
  0x8e   :  { %p607_p9 = pnand %p605_p8, %p602_p7 }
  0x90   :  { %610 = shalt.err (!%p607_p9)
}
  0x91   :  { %490 = dma.vmem_to_hbm [thread:$0]  %s723_s23, 256, %s756_s2, [#allocation7], %s626_s4, %s626_s4, %s627_s5  }
  0x92   :  { %613 = dma.done.wait [#allocation4], 256  }
  0x93   :  { %614 = vsyncadd [#allocation4], 4294967040 }
  0x94   :  { %615 = dma.done.wait [#allocation7], 256  }
  0x95   :  { %616 = vsyncadd [#allocation7], 4294967040 }
  0x96   :  { %497 = vsyncpa [#allocation3], 1 }
  0x97   :  { %498 = vsyncpa [#allocation4], 1 }
  0x98   :  { %499 = vsyncpa [#allocation7], 1 }

</bundles_post_ra>
